<compile_context>
chip_gen: v7x
topology: tpu7x:2x2x1
jax: 0.10.0
libtpu: 0.0.40
codegen_flags: <defaults>
</compile_context>

<pallas_src>
import jax
import jax.numpy as jnp
from jax.experimental import pallas as pl
from jax.experimental.pallas import tpu as pltpu

_EPS = 1e-5
_LANE = 128


def _round_up(x, m):
    return ((x + m - 1) // m) * m


def _full_spec(shape):
    # Full-array block (block_shape == array shape) — always legal on TPU.
    return pl.BlockSpec(shape, lambda: tuple(0 for _ in shape))


def _vmem_budget_bytes(operand_bytes, act_bytes, out_bytes):
    """Per-generation VMEM budget from the real footprint (<= ~75% of phys)."""
    try:
        cap = int(pltpu.get_tpu_info().vmem_capacity_bytes)
    except Exception:
        cap = 128 * 1024 * 1024  # v5e/v6e physical; v7x handled by the min()
    need = 2 * (operand_bytes + out_bytes) + 4 * act_bytes + (8 << 20)
    return int(max(min(need, (cap * 3) // 4), 16 << 20))


# ---------------------------------------------------------------------------
# Kernels
# ---------------------------------------------------------------------------
def _make_linear_kernel(use_bf16):
    """num_layers == 1: plain y = x @ W + b."""
    mm_dtype = jnp.bfloat16 if use_bf16 else jnp.float32

    def kernel(x_ref, w_ref, b_ref, o_ref):
        y = jnp.dot(
            x_ref[...].astype(mm_dtype),
            w_ref[...].astype(mm_dtype),
            preferred_element_type=jnp.float32,
        )
        o_ref[...] = (y + b_ref[...].astype(jnp.float32)).astype(o_ref.dtype)

    return kernel


def _make_fused_mlp_kernel(num_layers, n_rows, use_bf16):
    """num_layers >= 2.

    Ref order: x, w_first, [w_mid (stacked)], bn_aux (stacked gamma/beta),
               w_last, b_last, out.
    Hidden-layer biases are intentionally absent (BN absorbs them).
    """
    inv_n = 1.0 / float(n_rows)
    mm_dtype = jnp.bfloat16 if use_bf16 else jnp.float32
    has_mid = num_layers > 2

    def kernel(*refs):
        if has_mid:
            x_ref, w_first_ref, w_mid_ref, bn_ref, w_last_ref, b_last_ref, o_ref = refs
        else:
            x_ref, w_first_ref, bn_ref, w_last_ref, b_last_ref, o_ref = refs
            w_mid_ref = None

        def bn_relu(y, layer):
            # BatchNorm1d (training) via sum / sum-of-squares; gamma folded
            # into the rsqrt scale so the epilogue is a single y*scale+shift.
            aux = bn_ref[layer].astype(jnp.float32)                 # (2, H)
            mean = jnp.sum(y, axis=0, keepdims=True) * inv_n
            mean_sq = jnp.sum(y * y, axis=0, keepdims=True) * inv_n
            var = jnp.maximum(mean_sq - mean * mean, 0.0)           # clamp
            scale = jax.lax.rsqrt(var + _EPS) * aux[0:1, :]         # gamma
            shift = aux[1:2, :] - mean * scale                      # beta - m*s
            return jnp.maximum(y * scale + shift, 0.0)              # BN + ReLU

        # Layer 0 (bias dropped: BN cancels it).
        y = jnp.dot(
            x_ref[...].astype(mm_dtype),
            w_first_ref[...].astype(mm_dtype),
            preferred_element_type=jnp.float32,
        )
        h = bn_relu(y, 0)

        # Middle layers (stacked weights, static unrolled loop).
        for m in range(num_layers - 2):
            y = jnp.dot(
                h.astype(mm_dtype),
                w_mid_ref[m].astype(mm_dtype),
                preferred_element_type=jnp.float32,
            )
            h = bn_relu(y, m + 1)

        # Final linear keeps its bias; single lane-dense store.
        y = jnp.dot(
            h.astype(mm_dtype),
            w_last_ref[...].astype(mm_dtype),
            preferred_element_type=jnp.float32,
        )
        o_ref[...] = (y + b_last_ref[...].astype(jnp.float32)).astype(o_ref.dtype)

    return kernel


# ---------------------------------------------------------------------------
# One-time parameter packing (pad to lane-dense shapes, stack, optional bf16)
# ---------------------------------------------------------------------------
def pack_mlp_params(params, use_bf16=False):
    num_layers = params["num_layers"]
    wdt = jnp.bfloat16 if use_bf16 else jnp.float32
    packed = {"num_layers": num_layers, "use_bf16": use_bf16}

    if num_layers == 1:
        w, b = params["linears"][0]
        d_in, d_out = w.shape
        out_p = _round_up(d_out, _LANE)
        packed["w"] = jnp.pad(w, ((0, 0), (0, out_p - d_out))).astype(wdt)
        packed["b"] = jnp.pad(b.reshape(1, -1), ((0, 0), (0, out_p - d_out)))
        packed["out_dim"] = d_out
        packed["out_dim_padded"] = out_p
        packed["feat_padded"] = out_p
        return packed

    hidden = params["linears"][0][0].shape[1]
    d_out = params["linears"][num_layers - 1][0].shape[1]
    h_p = _round_up(hidden, _LANE)
    out_p = _round_up(d_out, _LANE)

    # First layer weight: pad OUTPUT dim only (input/x stays unpadded).
    w0 = params["linears"][0][0]
    packed["w_first"] = jnp.pad(w0, ((0, 0), (0, h_p - hidden))).astype(wdt)

    # Middle weights stacked into a single operand (fewer DMA descriptors).
    if num_layers > 2:
        mids = [
            jnp.pad(params["linears"][l][0],
                    ((0, h_p - hidden), (0, h_p - hidden)))
            for l in range(1, num_layers - 1)
        ]
        packed["w_mid"] = jnp.stack(mids, axis=0).astype(wdt)

    # BN gamma/beta stacked: (num_layers-1, 2, h_p), kept in f32.
    bn_rows = [
        jnp.pad(jnp.stack([g, b_], axis=0), ((0, 0), (0, h_p - hidden)))
        for (g, b_) in params["bn"]
    ]
    packed["bn_aux"] = jnp.stack(bn_rows, axis=0)

    wl, bl = params["linears"][num_layers - 1]
    packed["w_last"] = jnp.pad(
        wl, ((0, h_p - hidden), (0, out_p - d_out))).astype(wdt)
    packed["b_last"] = jnp.pad(bl.reshape(1, -1), ((0, 0), (0, out_p - d_out)))

    packed["out_dim"] = d_out
    packed["out_dim_padded"] = out_p
    packed["feat_padded"] = max(h_p, out_p)
    return packed


# ---------------------------------------------------------------------------
# Forward: one fused pallas_call (x passed unpadded / uncast)
# ---------------------------------------------------------------------------
def mlp_forward(packed, x, out_dtype=jnp.float32):
    num_layers = packed["num_layers"]
    use_bf16 = packed["use_bf16"]
    N, d_in = x.shape
    out_p = packed["out_dim_padded"]

    if num_layers == 1:
        operands = [x, packed["w"], packed["b"]]
        kernel = _make_linear_kernel(use_bf16)
    else:
        operands = [x, packed["w_first"]]
        if num_layers > 2:
            operands.append(packed["w_mid"])
        operands += [packed["bn_aux"], packed["w_last"], packed["b_last"]]
        kernel = _make_fused_mlp_kernel(num_layers, N, use_bf16)

    in_specs = [_full_spec(op.shape) for op in operands]

    operand_bytes = sum(int(op.size) * op.dtype.itemsize for op in operands)
    act_bytes = N * max(packed["feat_padded"], d_in) * 4      # live f32 activation
    out_bytes = N * out_p * jnp.dtype(out_dtype).itemsize
    vmem = _vmem_budget_bytes(operand_bytes, act_bytes, out_bytes)

    out_padded = pl.pallas_call(
        kernel,
        out_shape=jax.ShapeDtypeStruct((N, out_p), out_dtype),
        in_specs=in_specs,
        out_specs=_full_spec((N, out_p)),
        compiler_params=pltpu.CompilerParams(vmem_limit_bytes=vmem),
    )(*operands)

    return out_padded[:, :packed["out_dim"]]


# ---------------------------------------------------------------------------
# Parameters (PyTorch-like nn.Linear init; weights stored as (D_in, D_out))
# ---------------------------------------------------------------------------
def init_mlp_params(key, num_layers, input_dim, hidden_dim, output_dim):
    if num_layers < 1:
        raise ValueError("Requires positive layer's number")

    def linear_init(key, fan_in, fan_out):
        kw, kb = jax.random.split(key)
        bound = 1.0 / jnp.sqrt(fan_in)
        w = jax.random.uniform(kw, (fan_in, fan_out), jnp.float32, -bound, bound)
        b = jax.random.uniform(kb, (fan_out,), jnp.float32, -bound, bound)
        return w, b

    params = {"num_layers": num_layers, "linears": [], "bn": []}
    if num_layers == 1:
        key, sub = jax.random.split(key)
        params["linears"].append(linear_init(sub, input_dim, output_dim))
        return params

    dims = [input_dim] + [hidden_dim] * (num_layers - 1) + [output_dim]
    for layer in range(num_layers):
        key, sub = jax.random.split(key)
        params["linears"].append(linear_init(sub, dims[layer], dims[layer + 1]))
    for _ in range(num_layers - 1):
        params["bn"].append(
            (jnp.ones((hidden_dim,), jnp.float32), jnp.zeros((hidden_dim,), jnp.float32))
        )
    return params


# ---------------------------------------------------------------------------
# Pure-JAX reference (matches PyTorch MLP.forward with BN in training mode)
# ---------------------------------------------------------------------------
def mlp_reference(params, x):
    num_layers = params["num_layers"]
    if num_layers == 1:
        w, b = params["linears"][0]
        return x @ w + b
    h = x
    for layer in range(num_layers - 1):
        w, b = params["linears"][layer]
        gamma, beta = params["bn"][layer]
        y = h @ w + b
        mean = jnp.mean(y, axis=0, keepdims=True)
        var = jnp.mean((y - mean) ** 2, axis=0, keepdims=True)
        y = (y - mean) / jnp.sqrt(var + _EPS)
        y = y * gamma + beta
        h = jnp.maximum(y, 0.0)
    w, b = params["linears"][num_layers - 1]
    return h @ w + b


if __name__ == "__main__":
    key = jax.random.PRNGKey(0)
    kparams, kx, kp1 = jax.random.split(key, 3)

    # Small shapes consistent with the module: GIN MLP on node features.
    num_layers, input_dim, hidden_dim, output_dim = 3, 16, 32, 8
    batch = 16  # multiple of 16 -> full bf16 sublane packing (and f32's 8)

    params = init_mlp_params(kparams, num_layers, input_dim, hidden_dim, output_dim)
    x = jax.random.normal(kx, (batch, input_dim), jnp.float32)
    ref = mlp_reference(params, x)

    # f32 MXU path: strict check vs reference.
    packed_f32 = pack_mlp_params(params, use_bf16=False)
    out = jax.block_until_ready(mlp_forward(packed_f32, x))
    assert out.shape == (batch, output_dim)
    assert jnp.allclose(out, ref, atol=1e-4, rtol=1e-4), "f32 mismatch vs reference"

    # bf16 MXU path (valid on v5e/v6e/v7x): relaxed tolerance.
    packed_bf16 = pack_mlp_params(params, use_bf16=True)
    out_bf16 = jax.block_until_ready(mlp_forward(packed_bf16, x))
    assert out_bf16.shape == (batch, output_dim)
    assert jnp.allclose(out_bf16, ref, atol=5e-2, rtol=5e-2), "bf16 mismatch vs reference"

    # num_layers == 1 (pure linear) path.
    params1 = init_mlp_params(kp1, 1, input_dim, hidden_dim, output_dim)
    ref1 = mlp_reference(params1, x)
    out1 = jax.block_until_ready(mlp_forward(pack_mlp_params(params1), x))
    assert out1.shape == (batch, output_dim)
    assert jnp.allclose(out1, ref1, atol=1e-4, rtol=1e-4), "linear mismatch vs reference"

    print("KERNEL_OK")
</pallas_src>

<mosaic_0001>
module attributes {stable_mosaic.version = 11 : i64} {
  func.func @kernel(%arg0: memref<16x16xf32, #tpu.memory_space<vmem>>, %arg1: memref<16x128xf32, #tpu.memory_space<vmem>>, %arg2: memref<1x128x128xf32, #tpu.memory_space<vmem>>, %arg3: memref<2x2x128xf32, #tpu.memory_space<vmem>>, %arg4: memref<128x128xf32, #tpu.memory_space<vmem>>, %arg5: memref<1x128xf32, #tpu.memory_space<vmem>>, %arg6: memref<16x128xf32, #tpu.memory_space<vmem>>) attributes {dimension_semantics = [], scalar_prefetch = 0 : i64, scratch_operands = 0 : i64, tpu.core_type = #tpu.core_type<tc>} {
    %c0 = arith.constant 0 : index
    %c0_0 = arith.constant 0 : index
    %0 = vector.load %arg0[%c0, %c0_0] : memref<16x16xf32, #tpu.memory_space<vmem>>, vector<16x16xf32>
    %c0_1 = arith.constant 0 : index
    %c0_2 = arith.constant 0 : index
    %1 = vector.load %arg1[%c0_1, %c0_2] : memref<16x128xf32, #tpu.memory_space<vmem>>, vector<16x128xf32>
    %cst = arith.constant dense<0.000000e+00> : vector<16x128xf32>
    %2 = tpu.matmul %0, %1, %cst {dimension_numbers = #tpu.dot_dimension_numbers<[1], [0], [0], [1], [0, 0, 1, 1], [], []>} : vector<16x16xf32>, vector<16x128xf32>, vector<16x128xf32> -> vector<16x128xf32>
    %c0_3 = arith.constant 0 : index
    %c0_4 = arith.constant 0 : index
    %c0_5 = arith.constant 0 : index
    %3 = vector.load %arg3[%c0_3, %c0_4, %c0_5] : memref<2x2x128xf32, #tpu.memory_space<vmem>>, vector<1x2x128xf32>
    %4 = vector.shape_cast %3 : vector<1x2x128xf32> to vector<2x128xf32>
    %cst_6 = arith.constant dense<0.000000e+00> : vector<128xf32>
    %5 = vector.multi_reduction <add>, %2, %cst_6 [0] : vector<16x128xf32> to vector<128xf32>
    %6 = vector.shape_cast %5 : vector<128xf32> to vector<1x128xf32>
    %cst_7 = arith.constant 6.250000e-02 : f32
    %7 = vector.broadcast %cst_7 : f32 to vector<1x128xf32>
    %8 = arith.mulf %6, %7 : vector<1x128xf32>
    %9 = arith.mulf %2, %2 : vector<16x128xf32>
    %cst_8 = arith.constant dense<0.000000e+00> : vector<128xf32>
    %10 = vector.multi_reduction <add>, %9, %cst_8 [0] : vector<16x128xf32> to vector<128xf32>
    %11 = vector.shape_cast %10 : vector<128xf32> to vector<1x128xf32>
    %cst_9 = arith.constant 6.250000e-02 : f32
    %12 = vector.broadcast %cst_9 : f32 to vector<1x128xf32>
    %13 = arith.mulf %11, %12 : vector<1x128xf32>
    %14 = arith.mulf %8, %8 : vector<1x128xf32>
    %15 = arith.subf %13, %14 : vector<1x128xf32>
    %cst_10 = arith.constant 0.000000e+00 : f32
    %16 = vector.broadcast %cst_10 : f32 to vector<1x128xf32>
    %17 = arith.maximumf %15, %16 : vector<1x128xf32>
    %cst_11 = arith.constant 9.99999974E-6 : f32
    %18 = vector.broadcast %cst_11 : f32 to vector<1x128xf32>
    %19 = arith.addf %17, %18 : vector<1x128xf32>
    %20 = math.rsqrt %19 : vector<1x128xf32>
    %21 = vector.extract_strided_slice %4 {offsets = [0, 0], sizes = [1, 128], strides = [1, 1]} : vector<2x128xf32> to vector<1x128xf32>
    %22 = arith.mulf %20, %21 : vector<1x128xf32>
    %23 = vector.extract_strided_slice %4 {offsets = [1, 0], sizes = [1, 128], strides = [1, 1]} : vector<2x128xf32> to vector<1x128xf32>
    %24 = arith.mulf %8, %22 : vector<1x128xf32>
    %25 = arith.subf %23, %24 : vector<1x128xf32>
    %26 = vector.broadcast %22 : vector<1x128xf32> to vector<16x128xf32>
    %27 = arith.mulf %2, %26 : vector<16x128xf32>
    %28 = vector.broadcast %25 : vector<1x128xf32> to vector<16x128xf32>
    %29 = arith.addf %27, %28 : vector<16x128xf32>
    %cst_12 = arith.constant 0.000000e+00 : f32
    %30 = vector.broadcast %cst_12 : f32 to vector<16x128xf32>
    %31 = arith.maximumf %29, %30 : vector<16x128xf32>
    %c0_13 = arith.constant 0 : index
    %c0_14 = arith.constant 0 : index
    %c0_15 = arith.constant 0 : index
    %32 = vector.load %arg2[%c0_13, %c0_14, %c0_15] : memref<1x128x128xf32, #tpu.memory_space<vmem>>, vector<1x128x128xf32>
    %33 = vector.shape_cast %32 : vector<1x128x128xf32> to vector<128x128xf32>
    %cst_16 = arith.constant dense<0.000000e+00> : vector<16x128xf32>
    %34 = tpu.matmul %31, %33, %cst_16 {dimension_numbers = #tpu.dot_dimension_numbers<[1], [0], [0], [1], [0, 0, 1, 1], [], []>} : vector<16x128xf32>, vector<128x128xf32>, vector<16x128xf32> -> vector<16x128xf32>
    %c1 = arith.constant 1 : index
    %c0_17 = arith.constant 0 : index
    %c0_18 = arith.constant 0 : index
    %35 = vector.load %arg3[%c1, %c0_17, %c0_18] : memref<2x2x128xf32, #tpu.memory_space<vmem>>, vector<1x2x128xf32>
    %36 = vector.shape_cast %35 : vector<1x2x128xf32> to vector<2x128xf32>
    %cst_19 = arith.constant dense<0.000000e+00> : vector<128xf32>
    %37 = vector.multi_reduction <add>, %34, %cst_19 [0] : vector<16x128xf32> to vector<128xf32>
    %38 = vector.shape_cast %37 : vector<128xf32> to vector<1x128xf32>
    %cst_20 = arith.constant 6.250000e-02 : f32
    %39 = vector.broadcast %cst_20 : f32 to vector<1x128xf32>
    %40 = arith.mulf %38, %39 : vector<1x128xf32>
    %41 = arith.mulf %34, %34 : vector<16x128xf32>
    %cst_21 = arith.constant dense<0.000000e+00> : vector<128xf32>
    %42 = vector.multi_reduction <add>, %41, %cst_21 [0] : vector<16x128xf32> to vector<128xf32>
    %43 = vector.shape_cast %42 : vector<128xf32> to vector<1x128xf32>
    %cst_22 = arith.constant 6.250000e-02 : f32
    %44 = vector.broadcast %cst_22 : f32 to vector<1x128xf32>
    %45 = arith.mulf %43, %44 : vector<1x128xf32>
    %46 = arith.mulf %40, %40 : vector<1x128xf32>
    %47 = arith.subf %45, %46 : vector<1x128xf32>
    %cst_23 = arith.constant 0.000000e+00 : f32
    %48 = vector.broadcast %cst_23 : f32 to vector<1x128xf32>
    %49 = arith.maximumf %47, %48 : vector<1x128xf32>
    %cst_24 = arith.constant 9.99999974E-6 : f32
    %50 = vector.broadcast %cst_24 : f32 to vector<1x128xf32>
    %51 = arith.addf %49, %50 : vector<1x128xf32>
    %52 = math.rsqrt %51 : vector<1x128xf32>
    %53 = vector.extract_strided_slice %36 {offsets = [0, 0], sizes = [1, 128], strides = [1, 1]} : vector<2x128xf32> to vector<1x128xf32>
    %54 = arith.mulf %52, %53 : vector<1x128xf32>
    %55 = vector.extract_strided_slice %36 {offsets = [1, 0], sizes = [1, 128], strides = [1, 1]} : vector<2x128xf32> to vector<1x128xf32>
    %56 = arith.mulf %40, %54 : vector<1x128xf32>
    %57 = arith.subf %55, %56 : vector<1x128xf32>
    %58 = vector.broadcast %54 : vector<1x128xf32> to vector<16x128xf32>
    %59 = arith.mulf %34, %58 : vector<16x128xf32>
    %60 = vector.broadcast %57 : vector<1x128xf32> to vector<16x128xf32>
    %61 = arith.addf %59, %60 : vector<16x128xf32>
    %cst_25 = arith.constant 0.000000e+00 : f32
    %62 = vector.broadcast %cst_25 : f32 to vector<16x128xf32>
    %63 = arith.maximumf %61, %62 : vector<16x128xf32>
    %c0_26 = arith.constant 0 : index
    %c0_27 = arith.constant 0 : index
    %64 = vector.load %arg4[%c0_26, %c0_27] : memref<128x128xf32, #tpu.memory_space<vmem>>, vector<128x128xf32>
    %cst_28 = arith.constant dense<0.000000e+00> : vector<16x128xf32>
    %65 = tpu.matmul %63, %64, %cst_28 {dimension_numbers = #tpu.dot_dimension_numbers<[1], [0], [0], [1], [0, 0, 1, 1], [], []>} : vector<16x128xf32>, vector<128x128xf32>, vector<16x128xf32> -> vector<16x128xf32>
    %c0_29 = arith.constant 0 : index
    %c0_30 = arith.constant 0 : index
    %66 = vector.load %arg5[%c0_29, %c0_30] : memref<1x128xf32, #tpu.memory_space<vmem>>, vector<1x128xf32>
    %67 = vector.broadcast %66 : vector<1x128xf32> to vector<16x128xf32>
    %68 = arith.addf %65, %67 : vector<16x128xf32>
    %c0_31 = arith.constant 0 : index
    %c0_32 = arith.constant 0 : index
    %69 = vector.load %arg6[%c0_31, %c0_32] : memref<16x128xf32, #tpu.memory_space<vmem>>, vector<16x128xf32>
    tpu.vector_store %arg6[%c0_31, %c0_32], %68 {strides = array<i32>} : memref<16x128xf32, #tpu.memory_space<vmem>>, vector<16x128xf32>,
    return
  }
}

</mosaic_0001>

<bundles_post_ra>
// kernel: tpu_custom_call.1
= control target key start
LH: loop header
LB: loop body
LE: loop exit
PB: predicated region body
PF: predicated region fallthrough
CT: control target
= control target key end

     0   :  { %11 = vsyncpa [#allocation3], 0  ;;  %s934_s0 = inlined_call_operand.hbm [shape: f32[16,16], index: 0, kind: input, shape index: {}]   ;;  %s935_s1 = inlined_call_operand.hbm [shape: f32[16,128], index: 1, kind: input, shape index: {}]   ;;  %s936_s2 = inlined_call_operand.hbm [shape: f32[1,128,128], index: 2, kind: input, shape index: {}]   ;;  %s937_s3 = inlined_call_operand.vmem [shape: f32[2,2,128], index: 3, kind: input, shape index: {}]   ;;  %s938_s4 = inlined_call_operand.hbm [shape: f32[128,128], index: 4, kind: input, shape index: {}]   ;;  %s939_s5 = inlined_call_operand.vmem [shape: f32[1,128], index: 5, kind: input, shape index: {}]   ;;  %s940_s6 = inlined_call_operand.hbm [shape: f32[16,128], index: 6, kind: output, shape index: {}]  }
   0x1   :  { %12 = vsyncpa [#allocation6], 0 }
   0x2   :  { %13 = vsyncpa [#allocation9], 0 }
   0x3   :  { %14 = vsyncpa [#allocation4], 0  ;;  %s782_s21 = smov [#allocation5]   ;;  %s783_s23 = smov [#allocation2]  }
   0x4   :  { %s32_s22 = sshll.u32 %s782_s21, 4  ;;  %s20_s24 = sshll.u32 %s783_s23, 4  ;;  %s33_s22 = int_to_ptr.vmem [resolvable:$true] %s32_s22  ;;  %s824_s24 = int_to_ptr.vmem [resolvable:$true] %s20_s24 }
   0x5   :  { %s664_s27 = scalar_lea.hbm %s935_s1, 256 }
   0x6   :  { %p665_p0 = scmp.ne.s32.totalorder %s935_s1, %s664_s27  ;;  %p668_p1 = scmp.lt.u32.totalorder %s664_s27, %s935_s1 }
   0x8   :  { %p670_p2 = pnand %p668_p1, %p665_p0 }
   0xa   :  { %673 = shalt.err (!%p670_p2)
}
   0xb   :  { %s674_s8 = scalar_lea.vmem %s33_s22, 256  ;;  %p679_p4 = scmp.lt.s32.totalorder %s33_s22, %s33_s22 }
   0xc   :  { %p675_p3 = scmp.ne.s32.totalorder %s33_s22, %s674_s8  ;;  %p680_p5 = scmp.lt.s32.totalorder %s674_s8, %s674_s8 }
   0xe   :  { %p681_p6 = por %p680_p5, %p679_p4 }
  0x10   :  { %p682_p7 = pnand %p681_p6, %p675_p3 }
  0x12   :  { %685 = shalt.err (!%p682_p7)
}
  0x13   :  { %s784_s9 = smov 128   ;;  %s785_s10 = smov 8  }
  0x14   :  { %38 = dma.hbm_to_vmem [thread:$0]  %s935_s1, 256, %s33_s22, [#allocation6], %s784_s9, %s784_s9, %s785_s10  }
  0x15   :  { %s686_s15 = scalar_lea.hbm %s934_s0, 256 }
  0x16   :  { %p687_p8 = scmp.ne.s32.totalorder %s934_s0, %s686_s15  ;;  %p690_p9 = scmp.lt.u32.totalorder %s686_s15, %s934_s0 }
  0x18   :  { %p692_p10 = pnand %p690_p9, %p687_p8 }
  0x1a   :  { %695 = shalt.err (!%p692_p10)
}
  0x1b   :  { %s696_s20 = scalar_lea.vmem %s824_s24, 256  ;;  %p701_p12 = scmp.lt.s32.totalorder %s824_s24, %s824_s24 }
  0x1c   :  { %p697_p11 = scmp.ne.s32.totalorder %s824_s24, %s696_s20  ;;  %p702_p13 = scmp.lt.s32.totalorder %s696_s20, %s696_s20 }
  0x1e   :  { %p703_p0 = por %p702_p13, %p701_p12 }
  0x20   :  { %p704_p1 = pnand %p703_p0, %p697_p11 }
  0x22   :  { %707 = shalt.err (!%p704_p1)
}
  0x23   :  { %26 = dma.hbm_to_vmem [thread:$0]  %s934_s0, 256, %s824_s24, [#allocation3], %s784_s9, %s784_s9, %s785_s10  }
  0x24   :  { %s786_s22 = smov [#allocation7]   ;;  %s787_s25 = smov [#allocation8]  }
  0x25   :  { %s44_s23 = sshll.u32 %s786_s22, 4  ;;  %s58_s26 = sshll.u32 %s787_s25, 4  ;;  %s45_s23 = int_to_ptr.vmem [resolvable:$true] %s44_s23  ;;  %s861_s26 = int_to_ptr.vmem [resolvable:$true] %s58_s26 }
  0x26   :  { %s708_s29 = scalar_lea.hbm %s936_s2, 2048 }
  0x27   :  { %p709_p2 = scmp.ne.s32.totalorder %s936_s2, %s708_s29  ;;  %p712_p3 = scmp.lt.u32.totalorder %s708_s29, %s936_s2 }
  0x29   :  { %p714_p4 = pnand %p712_p3, %p709_p2 }
  0x2b   :  { %717 = shalt.err (!%p714_p4)
}
  0x2c   :  { %s718_s0 = scalar_lea.vmem %s45_s23, 2048  ;;  %p723_p6 = scmp.lt.s32.totalorder %s45_s23, %s45_s23 }
  0x2d   :  { %p719_p5 = scmp.ne.s32.totalorder %s45_s23, %s718_s0  ;;  %p724_p7 = scmp.lt.s32.totalorder %s718_s0, %s718_s0 }
  0x2f   :  { %p725_p8 = por %p724_p7, %p723_p6 }
  0x31   :  { %p726_p9 = pnand %p725_p8, %p719_p5 }
  0x33   :  { %729 = shalt.err (!%p726_p9)
}
  0x34   :  { %50 = dma.hbm_to_vmem [thread:$0]  %s936_s2, 2048, %s45_s23, [#allocation6], %s784_s9, %s784_s9, %s785_s10  }
  0x35   :  { %s730_s15 = scalar_lea.hbm %s938_s4, 2048 }
  0x36   :  { %p731_p10 = scmp.ne.s32.totalorder %s938_s4, %s730_s15  ;;  %p734_p11 = scmp.lt.u32.totalorder %s730_s15, %s938_s4 }
  0x38   :  { %p736_p12 = pnand %p734_p11, %p731_p10 }
  0x3a   :  { %739 = shalt.err (!%p736_p12)
}
  0x3b   :  { %s740_s20 = scalar_lea.vmem %s861_s26, 2048  ;;  %p745_p0 = scmp.lt.s32.totalorder %s861_s26, %s861_s26 }
  0x3c   :  { %p741_p13 = scmp.ne.s32.totalorder %s861_s26, %s740_s20  ;;  %p746_p1 = scmp.lt.s32.totalorder %s740_s20, %s740_s20 }
  0x3e   :  { %p747_p2 = por %p746_p1, %p745_p0 }
  0x40   :  { %p748_p3 = pnand %p747_p2, %p741_p13 }
  0x42   :  { %751 = shalt.err (!%p748_p3)
}
  0x43   :  { %64 = dma.hbm_to_vmem [thread:$0]  %s938_s4, 2048, %s861_s26, [#allocation9], %s784_s9, %s784_s9, %s785_s10  }
  0x44   :  { %774 = dma.done.wait [#allocation3], 256  }
  0x45   :  { %775 = vsyncadd [#allocation3], 4294967040 }
  0x46   :  { %776 = dma.done.wait [#allocation6], 2304  }
  0x47   :  { %777 = vsyncadd [#allocation6], 4294964992 }
  0x48   :  { %778 = dma.done.wait [#allocation9], 2048  }
  0x49   :  { %779 = vsyncadd [#allocation9], 4294965248  ;;  %vm83_vm0 = vcmask 130048   ;;  %v81_v0 = vld [vmem:[#allocation5] sm:$0xff]  ;;  %v82_v1 = vld [vmem:[#allocation5 + $0x8] sm:$0xff]  ;;  %v195_v53 = vlaneseq  ;;  %s788_s26 = smov [#allocation10]  }
  0x4a   :  { %v79_v2 = vld [vmem:[#allocation2] sm:$0xff]  ;;  %v585_v3 = vpack.c.bf16 %v82_v1, %v81_v0  ;;  %v80_v4 = vld [vmem:[#allocation2 + $0x8] sm:$0xff]  ;;  %v211_v8 = vld [vmem:[#allocation7 + $0x10] sm:$0xff]  ;;  %s450_s27 = sshll.u32 %s788_s26, 4  ;;  %s451_s27 = int_to_ptr.vmem [resolvable:$true] %s450_s27 }
  0x4b   :  { %512 = vmatprep.mubr.msk.f32.mxu0 %vm83_vm0, %v79_v2  ;;  %v209_v5 = vld [vmem:[#allocation7] sm:$0xff]  ;;  %v210_v6 = vld [vmem:[#allocation7 + $0x8] sm:$0xff]  ;;  %v212_v9 = vld [vmem:[#allocation7 + $0x18] sm:$0xff]  ;;  %v898_v54 = vshrl.u32 %v195_v53, 7  ;;  %s752_s28 = scalar_lea.vmem %s451_s27, 256  ;;  %p757_p5 = scmp.lt.s32.totalorder %s451_s27, %s451_s27 }
  0x4c   :  { %586 = vmatprep.subr.bf16.mxu0 %v585_v3  ;;  %v589_v7 = vpack.c.bf16 %v210_v6, %v209_v5  ;;  %v593_v10 = vpack.c.bf16 %v212_v9, %v211_v8  ;;  %v213_v11 = vld [vmem:[#allocation7 + $0x20] sm:$0xff]  ;;  %v214_v12 = vld [vmem:[#allocation7 + $0x28] sm:$0xff]  ;;  %v215_v14 = vld [vmem:[#allocation7 + $0x30] sm:$0xff]  ;;  %p753_p4 = scmp.ne.s32.totalorder %s451_s27, %s752_s28  ;;  %p758_p6 = scmp.lt.s32.totalorder %s752_s28, %s752_s28 }
  0x4d   :  { %588 = vmatpush3.bf16.msra.mxu0 %v585_v3  ;;  %v597_v13 = vpack.c.bf16 %v214_v12, %v213_v11  ;;  %v216_v15 = vld [vmem:[#allocation7 + $0x38] sm:$0xff]  ;;  %v217_v17 = vld [vmem:[#allocation7 + $0x40] sm:$0xff]  ;;  %v218_v18 = vld [vmem:[#allocation7 + $0x48] sm:$0xff]  ;;  %v197_v56 = vsub.s32 0, %v898_v54  ;;  %v203_v63 = vsub.s32 1, %v898_v54 }
  0x4e   :  { %590 = vmatprep.subr.bf16.mxu1 %v589_v7  ;;  %v601_v16 = vpack.c.bf16 %v216_v15, %v215_v14  ;;  %v605_v19 = vpack.c.bf16 %v218_v18, %v217_v17  ;;  %v219_v20 = vld [vmem:[#allocation7 + $0x50] sm:$0xff]  ;;  %v220_v21 = vld [vmem:[#allocation7 + $0x58] sm:$0xff]  ;;  %v221_v23 = vld [vmem:[#allocation7 + $0x60] sm:$0xff]  ;;  %p759_p7 = por %p758_p6, %p757_p5 }
  0x4f   :  { %592 = vmatpush3.bf16.msra.mxu1 %v589_v7  ;;  %v609_v22 = vpack.c.bf16 %v220_v21, %v219_v20  ;;  %v222_v24 = vld [vmem:[#allocation7 + $0x68] sm:$0xff]  ;;  %v223_v26 = vld [vmem:[#allocation7 + $0x70] sm:$0xff]  ;;  %v224_v27 = vld [vmem:[#allocation7 + $0x78] sm:$0xff] }
  0x50   :  { %513 = vmatmul.mubr.msk.f32.vlgmr.msra.gmra.mrb[0].mxu0 %vm83_vm0, %v80_v4  ;;  %594 = vmatprep.subr.bf16.mxu1 %v593_v10  ;;  %v613_v25 = vpack.c.bf16 %v222_v24, %v221_v23  ;;  %v617_v28 = vpack.c.bf16 %v224_v27, %v223_v26  ;;  %v165_v55 = vld [vmem:[%s937_s3] sm:$0x3]  ;;  %v346_v8 = vld [vmem:[#allocation8 + $0x8] sm:$0xff]  ;;  %v348_v11 = vld [vmem:[#allocation8 + $0x18] sm:$0xff]  ;;  %p760_p8 = pnand %p759_p7, %p753_p4 }
  0x51   :  { %v345_v7 = vld [vmem:[#allocation8] sm:$0xff]  ;;  %v350_v14 = vld [vmem:[#allocation8 + $0x28] sm:$0xff]  ;;  %v352_v17 = vld [vmem:[#allocation8 + $0x38] sm:$0xff] }
  0x52   :  { %v621_v9 = vpack.c.bf16 %v346_v8, %v345_v7  ;;  %v354_v20 = vld [vmem:[#allocation8 + $0x48] sm:$0xff]  ;;  %v356_v23 = vld [vmem:[#allocation8 + $0x58] sm:$0xff]  ;;  %v467_v8 = vld [vmem:[%s939_s5] ss:$0 sm:$0xff] }
  0x53   :  { %596 = vmatpush3.bf16.msra.mxu1 %v593_v10  ;;  %v347_v10 = vld [vmem:[#allocation8 + $0x10] sm:$0xff]  ;;  %v358_v26 = vld [vmem:[#allocation8 + $0x68] sm:$0xff] }
  0x54   :  { %598 = vmatprep.subr.bf16.mxu1 %v597_v13  ;;  %622 = vmatprep.subr.bf16.mxu0 %v621_v9  ;;  %v625_v12 = vpack.c.bf16 %v348_v11, %v347_v10 }
  0x55   :  { %624 = vmatpush3.bf16.msra.mxu0 %v621_v9 }
  0x56   :  { %626 = vmatprep.subr.bf16.mxu0 %v625_v12 }
  0x57   :  { %600 = vmatpush3.bf16.msra.mxu1 %v597_v13  ;;  %v349_v13 = vld [vmem:[#allocation8 + $0x20] sm:$0xff] }
  0x58   :  { %602 = vmatprep.subr.bf16.mxu1 %v601_v16  ;;  %v629_v15 = vpack.c.bf16 %v350_v14, %v349_v13 }
  0x59   :  { %628 = vmatpush3.bf16.msra.mxu0 %v625_v12 }
  0x5a   :  { %630 = vmatprep.subr.bf16.mxu0 %v629_v15 }
  0x5b   :  { %604 = vmatpush3.bf16.msra.mxu1 %v601_v16  ;;  %v351_v16 = vld [vmem:[#allocation8 + $0x30] sm:$0xff] }
  0x5c   :  { %606 = vmatprep.subr.bf16.mxu1 %v605_v19  ;;  %v633_v18 = vpack.c.bf16 %v352_v17, %v351_v16 }
  0x5d   :  { %632 = vmatpush3.bf16.msra.mxu0 %v629_v15 }
  0x5e   :  { %634 = vmatprep.subr.bf16.mxu0 %v633_v18 }
  0x5f   :  { %608 = vmatpush3.bf16.msra.mxu1 %v605_v19  ;;  %v353_v19 = vld [vmem:[#allocation8 + $0x40] sm:$0xff] }
  0x60   :  { %610 = vmatprep.subr.bf16.mxu1 %v609_v22  ;;  %v637_v21 = vpack.c.bf16 %v354_v20, %v353_v19 }
  0x61   :  { %636 = vmatpush3.bf16.msra.mxu0 %v633_v18 }
  0x62   :  { %638 = vmatprep.subr.bf16.mxu0 %v637_v21 }
  0x63   :  { %612 = vmatpush3.bf16.msra.mxu1 %v609_v22  ;;  %v355_v22 = vld [vmem:[#allocation8 + $0x50] sm:$0xff] }
  0x64   :  { %614 = vmatprep.subr.bf16.mxu1 %v613_v25  ;;  %v641_v24 = vpack.c.bf16 %v356_v23, %v355_v22 }
  0x65   :  { %640 = vmatpush3.bf16.msra.mxu0 %v637_v21 }
  0x66   :  { %642 = vmatprep.subr.bf16.mxu0 %v641_v24 }
  0x67   :  { %616 = vmatpush3.bf16.msra.mxu1 %v613_v25  ;;  %v357_v25 = vld [vmem:[#allocation8 + $0x60] sm:$0xff] }
  0x68   :  { %618 = vmatprep.subr.bf16.mxu1 %v617_v28  ;;  %v645_v27 = vpack.c.bf16 %v358_v26, %v357_v25 }
  0x69   :  { %644 = vmatpush3.bf16.msra.mxu0 %v641_v24 }
  0x6a   :  { %646 = vmatprep.subr.bf16.mxu0 %v645_v27 }
  0x6b   :  { %620 = vmatpush3.bf16.msra.mxu1 %v617_v28  ;;  %v359_v28 = vld [vmem:[#allocation8 + $0x70] sm:$0xff] }
  0x6d   :  { %648 = vmatpush3.bf16.msra.mxu0 %v645_v27 }
 0x123   :  { %v514_v29 = vpop.f32.mrb[0].mxu0 }
 0x124   :  { %v175_v30 = vmul.f32 %v514_v29, %v514_v29  ;;  %v156_v31 = vpop.f32.mrb[1].mxu0 }
 0x125   :  { %v166_v32 = vadd.f32 %v514_v29, %v156_v31  ;;  %v174_v33 = vmul.f32 %v156_v31, %v156_v31 }
 0x127   :  { %v167_v34 = vrot.slane %v166_v32, 4  ;;  %v176_v35 = vadd.f32 %v175_v30, %v174_v33 }
 0x129   :  { %v168_v36 = vadd.f32 %v167_v34, %v166_v32  ;;  %v177_v37 = vrot.slane %v176_v35, 4 }
 0x12b   :  { %v169_v38 = vrot.slane %v168_v36, 2  ;;  %v178_v39 = vadd.f32 %v177_v37, %v176_v35 }
 0x12d   :  { %v170_v40 = vadd.f32 %v169_v38, %v168_v36  ;;  %v179_v41 = vrot.slane %v178_v39, 2 }
 0x12f   :  { %v171_v42 = vrot.slane %v170_v40, 1  ;;  %v180_v43 = vadd.f32 %v179_v41, %v178_v39 }
 0x131   :  { %v181_v44 = vrot.slane %v180_v43, 1  ;;  %v172_v45 = vadd.f32 %v171_v42, %v170_v40 }
 0x133   :  { %v182_v46 = vadd.f32 %v181_v44, %v180_v43  ;;  %v173_v47 = vmul.f32 0.0625, %v172_v45 }
 0x135   :  { %v183_v48 = vmul.f32 0.0625, %v182_v46  ;;  %v184_v49 = vmul.f32 %v173_v47, %v173_v47 }
 0x137   :  { %v185_v50 = vsub.f32 %v183_v48, %v184_v49 }
 0x139   :  { %v186_v51 = vmax.f32 %v185_v50, 0.0 }
 0x13b   :  { %v187_v52 = vadd.f32 1e-05, %v186_v51 }
 0x13d   :  { %660 = vrsqrt.f32 %v187_v52 }
 0x147   :  { %v661_v57 = vpop.eup %660 }
 0x148   :  { %v189_v58 = vmul.f32 %v661_v57, %v165_v55  ;;  %v466_v57 = vld [vmem:[%s937_s3 + $0x2] sm:$0x3] }
 0x14a   :  { %v190_v59 = vmul.f32 %v189_v58, %v173_v47  ;;  %v198_v60 = vrot.slane %v189_v58, %v197_v56 }
 0x14c   :  { %v192_v61 = vrot.slane %v190_v59, 7  ;;  %v199_v62 = vmul.f32 %v198_v60, %v156_v31  ;;  %v200_v0 = vmul.f32 %v514_v29, %v198_v60  ;;  %v360_v29 = vld [vmem:[#allocation8 + $0x78] sm:$0xff] }
 0x14d   :  { %v649_v30 = vpack.c.bf16 %v360_v29, %v359_v28 }
 0x14e   :  { %v194_v1 = vsub.f32 %v165_v55, %v192_v61 }
 0x14f   :  { %650 = vmatprep.subr.bf16.mxu0 %v649_v30 }
 0x150   :  { %v204_v2 = vrot.slane %v194_v1, %v203_v63  ;;  %652 = vmatpush3.bf16.msra.mxu0 %v649_v30 }
 0x152   :  { %v205_v3 = vadd.f32 %v204_v2, %v199_v62  ;;  %v206_v4 = vadd.f32 %v204_v2, %v200_v0 }
 0x154   :  { %v207_v5 = vmax.f32 %v205_v3, 0.0  ;;  %v208_v6 = vmax.f32 %v206_v4, 0.0 }
 0x156   :  { %547 = vmatprep.mubr.f32.mxu1 %v207_v5 }
 0x157   :  { %548 = vmatmul.mubr.f32.vlgmr.msra.gmra.mrb[0].mxu1 %v208_v6 }
 0x22a   :  { %v549_v31 = vpop.f32.mrb[0].mxu1 }
 0x22b   :  { %v311_v32 = vmul.f32 %v549_v31, %v549_v31  ;;  %v291_v33 = vpop.f32.mrb[1].mxu1 }
 0x22c   :  { %v302_v34 = vadd.f32 %v549_v31, %v291_v33  ;;  %v310_v35 = vmul.f32 %v291_v33, %v291_v33 }
 0x22e   :  { %v303_v36 = vrot.slane %v302_v34, 4  ;;  %v312_v37 = vadd.f32 %v311_v32, %v310_v35 }
 0x230   :  { %v304_v38 = vadd.f32 %v303_v36, %v302_v34  ;;  %v313_v39 = vrot.slane %v312_v37, 4 }
 0x232   :  { %v305_v40 = vrot.slane %v304_v38, 2  ;;  %v314_v41 = vadd.f32 %v313_v39, %v312_v37 }
 0x234   :  { %v306_v42 = vadd.f32 %v305_v40, %v304_v38  ;;  %v315_v43 = vrot.slane %v314_v41, 2 }
 0x236   :  { %v307_v44 = vrot.slane %v306_v42, 1  ;;  %v316_v45 = vadd.f32 %v315_v43, %v314_v41 }
 0x238   :  { %v308_v46 = vadd.f32 %v307_v44, %v306_v42  ;;  %v317_v47 = vrot.slane %v316_v45, 1 }
 0x23a   :  { %v309_v48 = vmul.f32 0.0625, %v308_v46  ;;  %v318_v49 = vadd.f32 %v317_v47, %v316_v45 }
 0x23c   :  { %v319_v50 = vmul.f32 0.0625, %v318_v49  ;;  %v320_v51 = vmul.f32 %v309_v48, %v309_v48 }
 0x23e   :  { %v321_v52 = vsub.f32 %v319_v50, %v320_v51 }
 0x240   :  { %v322_v53 = vmax.f32 %v321_v52, 0.0 }
 0x242   :  { %v323_v55 = vadd.f32 1e-05, %v322_v53 }
 0x244   :  { %662 = vrsqrt.f32 %v323_v55 }
 0x24e   :  { %v663_v58 = vpop.eup %662 }
 0x24f   :  { %v325_v59 = vmul.f32 %v663_v58, %v466_v57 }
 0x251   :  { %v326_v60 = vmul.f32 %v325_v59, %v309_v48  ;;  %v334_v61 = vrot.slane %v325_v59, %v197_v56 }
 0x253   :  { %v328_v62 = vrot.slane %v326_v60, 7  ;;  %v335_v0 = vmul.f32 %v334_v61, %v291_v33  ;;  %v336_v1 = vmul.f32 %v549_v31, %v334_v61 }
 0x255   :  { %v330_v2 = vsub.f32 %v466_v57, %v328_v62 }
 0x257   :  { %v340_v3 = vrot.slane %v330_v2, %v203_v63 }
 0x259   :  { %v341_v4 = vadd.f32 %v340_v3, %v335_v0  ;;  %v342_v5 = vadd.f32 %v340_v3, %v336_v1 }
 0x25b   :  { %v343_v6 = vmax.f32 %v341_v4, 0.0  ;;  %v344_v7 = vmax.f32 %v342_v5, 0.0 }
 0x25d   :  { %582 = vmatprep.mubr.f32.mxu0 %v343_v6 }
 0x25e   :  { %583 = vmatmul.mubr.f32.vlgmr.msra.gmra.mrb[2].mxu0 %v344_v7 }
 0x331   :  { %v584_v56 = vpop.f32.mrb[2].mxu0 }
 0x332   :  { %v440_v9 = vadd.f32 %v584_v56, %v467_v8  ;;  %v434_v10 = vpop.f32.mrb[3].mxu0 }
 0x333   :  { %v435_v11 = vadd.f32 %v467_v8, %v434_v10 }
 0x334   :  { %444 = vst [vmem:[#allocation10 + $0x8] sm:$0xff] %v440_v9 }
 0x335   :  { %443 = vst [vmem:[#allocation10] sm:$0xff] %v435_v11 }
 0x336   :  { %763 = shalt.err (!%p760_p8)
}
 0x337   :  { %s764_s5 = scalar_lea.hbm %s940_s6, 256 }
 0x338   :  { %p765_p9 = scmp.ne.s32.totalorder %s940_s6, %s764_s5  ;;  %p768_p10 = scmp.lt.u32.totalorder %s764_s5, %s940_s6 }
 0x33a   :  { %p770_p11 = pnand %p768_p10, %p765_p9 }
 0x33c   :  { %773 = shalt.err (!%p770_p11)
}
 0x33d   :  { %456 = dma.vmem_to_hbm [thread:$0]  %s451_s27, 256, %s940_s6, [#allocation4], %s784_s9, %s784_s9, %s785_s10  }
 0x33e   :  { %780 = dma.done.wait [#allocation4], 256  }
 0x33f   :  { %781 = vsyncadd [#allocation4], 4294967040 }
 0x340   :  { %460 = vsyncpa [#allocation3], 1 }
 0x341   :  { %461 = vsyncpa [#allocation6], 1 }
 0x342   :  { %462 = vsyncpa [#allocation9], 1 }
 0x343   :  { %463 = vsyncpa [#allocation4], 1 }

</bundles_post_ra>
